<compile_context>
chip_gen: v7x
topology: tpu7x:2x2x1
jax: 0.10.0
libtpu: 0.0.40
codegen_flags: <defaults>
</compile_context>

<pallas_src>
import jax
import jax.numpy as jnp
from jax.experimental import pallas as pl
from jax.experimental.pallas import tpu as pltpu

STATE_DIM = 3      # Pendulum-v1 observation space
HIDDEN_DIM = 128
ACTION_DIM = 11
OUT_PAD = 128      # lane-dense output width (multiple of 128, >= ACTION_DIM)
TILE_B = 128       # batch rows per grid step


def qnet_kernel(x_ref, w1_ref, b1_ref, w2_ref, b2_ref, o_ref):
    # fc1: contraction dim K = STATE_DIM = 3 -> unrolled VPU broadcast-mul-add
    # (an MXU pass here would be >97% zero-padded and still pay push + drain).
    x = x_ref[...]                      # (TILE_B, STATE_DIM)
    w1 = w1_ref[...]                    # (STATE_DIM, HIDDEN_DIM)
    h = b1_ref[...]                     # (1, HIDDEN_DIM) -> broadcast over rows
    for k in range(STATE_DIM):          # static unroll, 3 iterations
        h = h + x[:, k:k + 1] * w1[k:k + 1, :]
    h = jnp.maximum(h, 0.0)             # ReLU, (TILE_B, HIDDEN_DIM)

    # fc2 on the MXU. w2/b2 are zero-padded to OUT_PAD=128 lanes so the write
    # below is a full-width unmasked store (no vst.msk on an 11-lane tail).
    y = jnp.dot(h, w2_ref[...], preferred_element_type=jnp.float32)
    o_ref[...] = (y + b2_ref[...]).astype(o_ref.dtype)


def qnet_forward(x, w1, b1, w2, b2):
    """forward(x) = fc2(relu(fc1(x))).  x: (B, STATE_DIM) float32."""
    B = x.shape[0]
    Bp = ((B + TILE_B - 1) // TILE_B) * TILE_B
    if Bp != B:                                   # pad batch to a tile multiple
        x = jnp.pad(x, ((0, Bp - B), (0, 0)))
    # Zero-pad fc2 to a lane-dense 128-wide output (extra cols compute to 0).
    w2p = jnp.pad(w2, ((0, 0), (0, OUT_PAD - ACTION_DIM)))
    b2p = jnp.pad(b2, ((0, 0), (0, OUT_PAD - ACTION_DIM)))

    grid = (Bp // TILE_B,)
    flops = 2 * Bp * (STATE_DIM * HIDDEN_DIM + HIDDEN_DIM * OUT_PAD)
    bytes_accessed = 4 * (Bp * STATE_DIM + STATE_DIM * HIDDEN_DIM + HIDDEN_DIM
                          + HIDDEN_DIM * OUT_PAD + OUT_PAD + Bp * OUT_PAD)

    out = pl.pallas_call(
        qnet_kernel,
        out_shape=jax.ShapeDtypeStruct((Bp, OUT_PAD), jnp.float32),
        grid_spec=pltpu.PrefetchScalarGridSpec(
            num_scalar_prefetch=0,
            grid=grid,
            in_specs=[
                pl.BlockSpec((TILE_B, STATE_DIM), lambda i: (i, 0)),
                # weights / biases: constant index_map -> VMEM-resident
                # across all batch-tile grid steps.
                pl.BlockSpec((STATE_DIM, HIDDEN_DIM), lambda i: (0, 0)),
                pl.BlockSpec((1, HIDDEN_DIM), lambda i: (0, 0)),
                pl.BlockSpec((HIDDEN_DIM, OUT_PAD), lambda i: (0, 0)),
                pl.BlockSpec((1, OUT_PAD), lambda i: (0, 0)),
            ],
            out_specs=pl.BlockSpec((TILE_B, OUT_PAD), lambda i: (i, 0)),
        ),
        compiler_params=pltpu.CompilerParams(
            dimension_semantics=("parallel",)),   # shards batch across TCs (v7x)
        cost_estimate=pl.CostEstimate(
            flops=flops, transcendentals=0, bytes_accessed=bytes_accessed),
    )(x, w1, b1, w2p, b2p)

    return out[:B, :ACTION_DIM]


def init_params(key):
    # Deterministic init mimicking torch.nn.Linear default:
    # U(-1/sqrt(fan_in), 1/sqrt(fan_in)) for both weights and biases.
    k1, k2, k3, k4 = jax.random.split(key, 4)
    bound1 = 1.0 / jnp.sqrt(STATE_DIM)
    bound2 = 1.0 / jnp.sqrt(HIDDEN_DIM)
    w1 = jax.random.uniform(k1, (STATE_DIM, HIDDEN_DIM), jnp.float32,
                            -bound1, bound1)
    b1 = jax.random.uniform(k2, (1, HIDDEN_DIM), jnp.float32, -bound1, bound1)
    w2 = jax.random.uniform(k3, (HIDDEN_DIM, ACTION_DIM), jnp.float32,
                            -bound2, bound2)
    b2 = jax.random.uniform(k4, (1, ACTION_DIM), jnp.float32, -bound2, bound2)
    return w1, b1, w2, b2


if __name__ == "__main__":
    key = jax.random.PRNGKey(0)
    k_params, k_x = jax.random.split(key)
    w1, b1, w2, b2 = init_params(k_params)

    # Batch of states (2 batch tiles -> exercises the parallel grid axis).
    batch = 256
    x = jax.random.normal(k_x, (batch, STATE_DIM), jnp.float32)

    out = qnet_forward(x, w1, b1, w2, b2)
    out = jax.block_until_ready(out)

    # Pure-JAX reference check of the same forward pass.
    ref = jnp.maximum(x @ w1 + b1, 0.0) @ w2 + b2
    assert out.shape == (batch, ACTION_DIM)
    assert jnp.allclose(out, ref, atol=1e-5, rtol=1e-5)

    print("KERNEL_OK")
</pallas_src>

<mosaic_0001>
module attributes {stable_mosaic.version = 11 : i64} {
  func.func @qnet_kernel(%arg0: i32, %arg1: memref<128x3xf32, #tpu.memory_space<vmem>>, %arg2: memref<3x128xf32, #tpu.memory_space<vmem>>, %arg3: memref<1x128xf32, #tpu.memory_space<vmem>>, %arg4: memref<128x128xf32, #tpu.memory_space<vmem>>, %arg5: memref<1x128xf32, #tpu.memory_space<vmem>>, %arg6: memref<128x128xf32, #tpu.memory_space<vmem>>) attributes {dimension_semantics = [#tpu.dimension_semantics<parallel>], iteration_bounds = array<i64: 2>, scalar_prefetch = 0 : i64, scratch_operands = 0 : i64, tpu.core_type = #tpu.core_type<tc>, window_params = [{transform_indices = @transform_0, window_bounds = array<i64: 128, 3>}, {pipeline_mode = #tpu.pipeline_mode<synchronous>, transform_indices = @transform_1, window_bounds = array<i64: 3, 128>}, {pipeline_mode = #tpu.pipeline_mode<synchronous>, transform_indices = @transform_2, window_bounds = array<i64: 1, 128>}, {pipeline_mode = #tpu.pipeline_mode<synchronous>, transform_indices = @transform_3, window_bounds = array<i64: 128, 128>}, {pipeline_mode = #tpu.pipeline_mode<synchronous>, transform_indices = @transform_4, window_bounds = array<i64: 1, 128>}, {transform_indices = @transform_5, window_bounds = array<i64: 128, 128>}]} {
    %c0 = arith.constant 0 : index
    %c0_0 = arith.constant 0 : index
    %0 = vector.load %arg1[%c0, %c0_0] : memref<128x3xf32, #tpu.memory_space<vmem>>, vector<128x3xf32>
    %c0_1 = arith.constant 0 : index
    %c0_2 = arith.constant 0 : index
    %1 = vector.load %arg2[%c0_1, %c0_2] : memref<3x128xf32, #tpu.memory_space<vmem>>, vector<3x128xf32>
    %c0_3 = arith.constant 0 : index
    %c0_4 = arith.constant 0 : index
    %2 = vector.load %arg3[%c0_3, %c0_4] : memref<1x128xf32, #tpu.memory_space<vmem>>, vector<1x128xf32>
    %3 = vector.extract_strided_slice %0 {offsets = [0, 0], sizes = [128, 1], strides = [1, 1]} : vector<128x3xf32> to vector<128x1xf32>
    %4 = vector.extract_strided_slice %1 {offsets = [0, 0], sizes = [1, 128], strides = [1, 1]} : vector<3x128xf32> to vector<1x128xf32>
    %5 = vector.broadcast %3 : vector<128x1xf32> to vector<128x128xf32>
    %6 = vector.broadcast %4 : vector<1x128xf32> to vector<128x128xf32>
    %7 = arith.mulf %5, %6 : vector<128x128xf32>
    %8 = vector.broadcast %2 : vector<1x128xf32> to vector<128x128xf32>
    %9 = arith.addf %8, %7 : vector<128x128xf32>
    %10 = vector.extract_strided_slice %0 {offsets = [0, 1], sizes = [128, 1], strides = [1, 1]} : vector<128x3xf32> to vector<128x1xf32>
    %11 = vector.extract_strided_slice %1 {offsets = [1, 0], sizes = [1, 128], strides = [1, 1]} : vector<3x128xf32> to vector<1x128xf32>
    %12 = vector.broadcast %10 : vector<128x1xf32> to vector<128x128xf32>
    %13 = vector.broadcast %11 : vector<1x128xf32> to vector<128x128xf32>
    %14 = arith.mulf %12, %13 : vector<128x128xf32>
    %15 = arith.addf %9, %14 : vector<128x128xf32>
    %16 = vector.extract_strided_slice %0 {offsets = [0, 2], sizes = [128, 1], strides = [1, 1]} : vector<128x3xf32> to vector<128x1xf32>
    %17 = vector.extract_strided_slice %1 {offsets = [2, 0], sizes = [1, 128], strides = [1, 1]} : vector<3x128xf32> to vector<1x128xf32>
    %18 = vector.broadcast %16 : vector<128x1xf32> to vector<128x128xf32>
    %19 = vector.broadcast %17 : vector<1x128xf32> to vector<128x128xf32>
    %20 = arith.mulf %18, %19 : vector<128x128xf32>
    %21 = arith.addf %15, %20 : vector<128x128xf32>
    %cst = arith.constant 0.000000e+00 : f32
    %22 = vector.broadcast %cst : f32 to vector<128x128xf32>
    %23 = arith.maximumf %21, %22 : vector<128x128xf32>
    %c0_5 = arith.constant 0 : index
    %c0_6 = arith.constant 0 : index
    %24 = vector.load %arg4[%c0_5, %c0_6] : memref<128x128xf32, #tpu.memory_space<vmem>>, vector<128x128xf32>
    %cst_7 = arith.constant dense<0.000000e+00> : vector<128x128xf32>
    %25 = tpu.matmul %23, %24, %cst_7 {dimension_numbers = #tpu.dot_dimension_numbers<[1], [0], [0], [1], [0, 0, 1, 1], [], []>} : vector<128x128xf32>, vector<128x128xf32>, vector<128x128xf32> -> vector<128x128xf32>
    %c0_8 = arith.constant 0 : index
    %c0_9 = arith.constant 0 : index
    %26 = vector.load %arg5[%c0_8, %c0_9] : memref<1x128xf32, #tpu.memory_space<vmem>>, vector<1x128xf32>
    %27 = vector.broadcast %26 : vector<1x128xf32> to vector<128x128xf32>
    %28 = arith.addf %25, %27 : vector<128x128xf32>
    %c0_10 = arith.constant 0 : index
    %c0_11 = arith.constant 0 : index
    %29 = vector.load %arg6[%c0_10, %c0_11] : memref<128x128xf32, #tpu.memory_space<vmem>>, vector<128x128xf32>
    tpu.vector_store %arg6[%c0_10, %c0_11], %28 {strides = array<i32>} : memref<128x128xf32, #tpu.memory_space<vmem>>, vector<128x128xf32>,
    return
  }
  func.func @transform_0(%arg0: i32) -> (i32, i32) {
    %c0_i32 = arith.constant 0 : i32
    %c0_i32_0 = arith.constant 0 : i32
    return %arg0, %c0_i32 : i32, i32
  }
  func.func @transform_1(%arg0: i32) -> (i32, i32) {
    %c0_i32 = arith.constant 0 : i32
    %c0_i32_0 = arith.constant 0 : i32
    %c0_i32_1 = arith.constant 0 : i32
    return %c0_i32, %c0_i32_0 : i32, i32
  }
  func.func @transform_2(%arg0: i32) -> (i32, i32) {
    %c0_i32 = arith.constant 0 : i32
    %c0_i32_0 = arith.constant 0 : i32
    %c0_i32_1 = arith.constant 0 : i32
    return %c0_i32, %c0_i32_0 : i32, i32
  }
  func.func @transform_3(%arg0: i32) -> (i32, i32) {
    %c0_i32 = arith.constant 0 : i32
    %c0_i32_0 = arith.constant 0 : i32
    %c0_i32_1 = arith.constant 0 : i32
    return %c0_i32, %c0_i32_0 : i32, i32
  }
  func.func @transform_4(%arg0: i32) -> (i32, i32) {
    %c0_i32 = arith.constant 0 : i32
    %c0_i32_0 = arith.constant 0 : i32
    %c0_i32_1 = arith.constant 0 : i32
    return %c0_i32, %c0_i32_0 : i32, i32
  }
  func.func @transform_5(%arg0: i32) -> (i32, i32) {
    %c0_i32 = arith.constant 0 : i32
    %c0_i32_0 = arith.constant 0 : i32
    return %arg0, %c0_i32 : i32, i32
  }
}

</mosaic_0001>

<bundles_post_ra>
// kernel: tpu_custom_call.1
= control target key start
LH: loop header
LB: loop body
LE: loop exit
PB: predicated region body
PF: predicated region fallthrough
CT: control target
= control target key end

     0   :  { %10 = vsyncpa [#allocation3], 0  ;;  %s1514_s0 = inlined_call_operand.vmem [shape: f32[256,3], index: 0, kind: input, shape index: {}]   ;;  %s1515_s1 = inlined_call_operand.vmem [shape: f32[3,128], index: 1, kind: input, shape index: {}]   ;;  %s1516_s2 = inlined_call_operand.vmem [shape: f32[1,128], index: 2, kind: input, shape index: {}]   ;;  %s1517_s3 = inlined_call_operand.vmem [shape: f32[128,128], index: 3, kind: input, shape index: {}]   ;;  %s1518_s4 = inlined_call_operand.vmem [shape: f32[1,128], index: 4, kind: input, shape index: {}]   ;;  %s1519_s5 = inlined_call_operand.hbm [shape: f32[256,128], index: 5, kind: output, shape index: {}]  }
   0x1   :  { %12 = vsyncpa [#allocation3 + $0x1], 0  ;;  %s1158_s18 = smov 0   ;;  %s1160_s19 = smov 0  }
   0x2   :  { %s1162_s20 = smov 0   ;;  %s1164_s21 = smov 0  }
   0x3 LB: > { %s1179_s22 = sadd.s32 4294967295, %s1120_s21   ;;  %s842_s23 = sadd.s32 4294967294, %s1120_s21   ;;  %s1120_s21 = sphi %s1164_s21, %s1525_s21   ;;  %s1116_s20 = sphi %s1162_s20, %s1524_s20   ;;  %s1112_s19 = sphi %s1160_s19, %s1523_s19   ;;  %s1108_s18 = sphi %s1158_s18, %s1522_s18  }
   0x4   : > { %s1183_s24 = sadd.s32 1, %s1120_s21   ;;  %s135_s25 = sadd.s32 1, %s1116_s20 }
   0x5   : > { %s132_s26 = ssub.s32 %s1120_s21, %s1183_s24  ;;  %p145_p0 = scmp.ne.s32.totalorder %s1116_s20, %s1112_s19 }
   0x6   : > { %p133_p1 = scmp.eq.s32.totalorder %s132_s26, 0  ;;  %p146_p2 = scmp.eq.s32.totalorder %s1179_s22, 1 }
   0x7   : > { %p151_p3 = scmp.ne.s32.totalorder %s1112_s19, %s1108_s18  ;;  %p152_p4 = scmp.eq.s32.totalorder %s842_s23, 1 }
   0x8   : > { %s1194_s27 = scalar_select %p133_p1, %s1116_s20, %s135_s25  }
   0x9   : > { %p1196_p5 = por %p146_p2, %p145_p0  ;;  %p1200_p6 = por %p152_p4, %p151_p3 }
   0xa   : > { %p845_p7 = scmp.ge.s32.totalorder %s1120_s21, 1  ;;  %p191_p8 = scmp.lt.s32.totalorder %s1120_s21, 3 }
   0xc   : > { %p192_p9 = pnand %p845_p7, %p191_p8 }
   0xd   : > { %s847_s30 = sshll.u32 (!%p192_p9), %s1179_s22, 4  ;;  %v1122_v0 = vmov (!%p192_p9), 0   ;;  %v1123_v6 = vmov (!%p192_p9), 1   ;;  %v582_v7 = vld [vmem:[%s1517_s3] sm:$0xff] (!%p192_p9)  ;;  %v583_v8 = vld [vmem:[%s1517_s3 + $0x8] sm:$0xff] (!%p192_p9)  ;;  %v584_v11 = vld [vmem:[%s1517_s3 + $0x10] sm:$0xff] (!%p192_p9)  ;;  %v324_v47 = vlaneseq (!%p192_p9) }
   0xe   : > { %195 = sbr.rel (%p192_p9) target bundleno = 518 (0x206), region = 40  ;;  %1038 = vset.pattern.permute.xlu1 (!%p192_p9), %v1122_v0  ;;  %1037 = vset.pattern.permute.xlu0 (!%p192_p9), %v1122_v0  ;;  %p220_p10 = scmp.lt.s32.totalorder (!%p192_p9), %s847_s30, 31  ;;  %v945_v10 = vpack.c.bf16 (!%p192_p9), %v583_v8, %v582_v7  ;;  %v585_v12 = vld [vmem:[%s1517_s3 + $0x18] sm:$0xff] (!%p192_p9)  ;;  %v586_v16 = vld [vmem:[%s1517_s3 + $0x20] sm:$0xff] (!%p192_p9)  ;;  %v587_v17 = vld [vmem:[%s1517_s3 + $0x28] sm:$0xff] (!%p192_p9)  ;;  %v1124_v24 = vmov (!%p192_p9), 2  }
   0xf   : > { %v949_v14 = vpack.c.bf16 (!%p192_p9), %v585_v12, %v584_v11  ;;  %v953_v19 = vpack.c.bf16 (!%p192_p9), %v587_v17, %v586_v16  ;;  %v588_v20 = vld [vmem:[%s1517_s3 + $0x30] sm:$0xff] (!%p192_p9)  ;;  %v589_v21 = vld [vmem:[%s1517_s3 + $0x38] sm:$0xff] (!%p192_p9)  ;;  %v590_v25 = vld [vmem:[%s1517_s3 + $0x40] sm:$0xff] (!%p192_p9)  ;;  %v325_v50 = vshrl.u32 (!%p192_p9), %v324_v47, 7  ;;  %s216_s15 = sand.u32 (!%p192_p9), 1, %s1112_s19   ;;  %s856_s26 = sshll.u32 (!%p192_p9), %s1179_s22, 11 }
  0x10   : > { %977 = vmatprep.subr.bf16.mxu1 (!%p192_p9), %v945_v10  ;;  %946 = vmatprep.subr.bf16.mxu0 (!%p192_p9), %v945_v10  ;;  %v957_v23 = vpack.c.bf16 (!%p192_p9), %v589_v21, %v588_v20  ;;  %v591_v26 = vld [vmem:[%s1517_s3 + $0x48] sm:$0xff] (!%p192_p9)  ;;  %v592_v28 = vld [vmem:[%s1517_s3 + $0x50] sm:$0xff] (!%p192_p9)  ;;  %v593_v29 = vld [vmem:[%s1517_s3 + $0x58] sm:$0xff] (!%p192_p9)  ;;  %s846_s16 = sshll.u32 (!%p192_p9), %s216_s15, 7  ;;  %s1465_s8 = scalar_lea.hbm (!%p192_p9), %s1519_s5, %s856_s26 }
  0x11   : > { %985 = vmatpush3.bf16.msra.mxu1 (!%p192_p9), %v945_v10  ;;  %948 = vmatpush3.bf16.msra.mxu0 (!%p192_p9), %v945_v10  ;;  %v961_v27 = vpack.c.bf16 (!%p192_p9), %v591_v26, %v590_v25  ;;  %v965_v31 = vpack.c.bf16 (!%p192_p9), %v593_v29, %v592_v28  ;;  %v594_v32 = vld [vmem:[%s1517_s3 + $0x60] sm:$0xff] (!%p192_p9)  ;;  %v595_v33 = vld [vmem:[%s1517_s3 + $0x68] sm:$0xff] (!%p192_p9)  ;;  %v596_v35 = vld [vmem:[%s1517_s3 + $0x70] sm:$0xff] (!%p192_p9)  ;;  %v326_v53 = vsub.s32 (!%p192_p9), 0, %v325_v50  ;;  %v432_v55 = vsub.s32 (!%p192_p9), 1, %v325_v50  ;;  %s1444_s25 = scalar_lea.vmem (!%p192_p9), [#allocation2], %s846_s16 }
  0x12   : > { %978 = vmatprep.subr.bf16.mxu1 (!%p192_p9), %v949_v14  ;;  %950 = vmatprep.subr.bf16.mxu0 (!%p192_p9), %v949_v14  ;;  %v969_v34 = vpack.c.bf16 (!%p192_p9), %v595_v33, %v594_v32  ;;  %v597_v36 = vld [vmem:[%s1517_s3 + $0x78] sm:$0xff] (!%p192_p9)  ;;  %v242_v54 = vld [vmem:[%s1515_s1] sm:$0x7] (!%p192_p9)  ;;  %v532_v62 = vsub.s32 (!%p192_p9), 2, %v325_v50  ;;  %s1473_s22 = scalar_lea.sflag (!%p192_p9), [#allocation3], %s216_s15  ;;  %s1125_s11 = smov (!%p192_p9), [#allocation2]  }
  0x13   : > { %v973_v37 = vpack.c.bf16 (!%p192_p9), %v597_v36, %v596_v35  ;;  %v1347_v57 = vrot.slane (!%p192_p9), %v242_v54, %v326_v53  ;;  %v1350_v60 = vrot.slane (!%p192_p9), %v242_v54, %v432_v55  ;;  %v1355_v63 = vld [vmem:[%s1516_s2] ss:$0 sm:$0xff] (!%p192_p9) }
  0x15   : > { %s1527_s30 = smov (!%p220_p10, %s847_s30), 31  ;;  %986 = vmatpush3.bf16.msra.mxu1 %v949_v14  ;;  %952 = vmatpush3.bf16.msra.mxu0 %v949_v14 }
  0x16   : > { %s848_s6 = sshll.u32 %s1527_s30, 3  ;;  %979 = vmatprep.subr.bf16.mxu1 %v953_v19  ;;  %954 = vmatprep.subr.bf16.mxu0 %v953_v19  ;;  %s780_s30 = sshll.u32 %s1444_s25, 4  ;;  %s1467_s30 = int_to_ptr.vmem [resolvable:$true] %s780_s30 }
  0x17   : > { %s1212_s9 = scalar_lea.vmem %s1514_s0, %s848_s6  ;;  %s1058_s10 = scalar_lea.vmem %s1467_s30, 2048 }
  0x18   : > { %v1215_v1 = vld [vmem:[%s1212_s9 + $0x8] sm:$0xff]  ;;  %v1218_v2 = vld [vmem:[%s1212_s9] sm:$0xff]  ;;  %v1228_v5 = vld [vmem:[%s1212_s9 + $0x50] sm:$0xff]  ;;  %p1059_p11 = scmp.ne.s32.totalorder %s1467_s30, %s1058_s10 }
  0x19   : > { %251 = vperm.xlu1 %1038, %v1215_v1   ;;  %246 = vperm.xlu0 %1037, %v1218_v2   ;;  %v1223_v3 = vld [vmem:[%s1212_s9 + $0x48] sm:$0xff]  ;;  %v234_v4 = vld [vmem:[%s1212_s9 + $0x40] sm:$0xff]  ;;  %v1239_v9 = vld [vmem:[%s1212_s9 + $0x18] sm:$0xff] }
  0x1a   : > { %v1250_v13 = vld [vmem:[%s1212_s9 + $0x20] sm:$0xff]  ;;  %v1253_v15 = vld [vmem:[%s1212_s9 + $0x10] sm:$0xff]  ;;  %987 = vmatpush3.bf16.msra.mxu1 %v953_v19  ;;  %v1275_v22 = vld [vmem:[%s1212_s9 + $0x38] sm:$0xff]  ;;  %956 = vmatpush3.bf16.msra.mxu0 %v953_v19  ;;  %p1060_p12 = pnand %p1059_p11, %p1196_p5 }
  0x1b   : > { %v1264_v18 = vld [vmem:[%s1212_s9 + $0x70] sm:$0xff]  ;;  %980 = vmatprep.subr.bf16.mxu1 %v957_v23  ;;  %958 = vmatprep.subr.bf16.mxu0 %v957_v23  ;;  %v237_v30 = vld [vmem:[%s1212_s9 + $0x58] sm:$0xff]  ;;  %v239_v38 = vld [vmem:[%s1212_s9 + $0x68] sm:$0xff] }
  0x1c   : > { %v238_v39 = vld [vmem:[%s1212_s9 + $0x60] sm:$0xff]  ;;  %v231_v40 = vld [vmem:[%s1212_s9 + $0x28] sm:$0xff]  ;;  %v232_v41 = vld [vmem:[%s1212_s9 + $0x30] sm:$0xff]  ;;  %p1061_p13 = pneg %p1060_p12 }
  0x1d   : > { %291 = vperm.xlu1 %1038, %v1223_v3   ;;  %286 = vperm.xlu0 %1037, %v234_v4   ;;  %v241_v42 = vld [vmem:[%s1212_s9 + $0x78] sm:$0xff]  ;;  %s1062_s9 = sshll.u32 %s1125_s11, 4  ;;  %s1063_s9 = int_to_ptr.vmem [resolvable:$false] %s1062_s9 }
  0x1e   : > { %988 = vmatpush3.bf16.msra.mxu1 %v957_v23  ;;  %960 = vmatpush3.bf16.msra.mxu0 %v957_v23  ;;  %s1064_s12 = scalar_lea.vmem %s1063_s9, 4096  ;;  %p1065_p0 = scmp.lt.s32.totalorder %s1467_s30, %s1063_s9 }
  0x1f   : > { %981 = vmatprep.subr.bf16.mxu1 %v961_v27  ;;  %962 = vmatprep.subr.bf16.mxu0 %v961_v27  ;;  %p1066_p1 = scmp.lt.s32.totalorder %s1064_s12, %s1058_s10 }
  0x21   : > { %1039 = vset.pattern.permute.xlu1 %v1123_v6  ;;  %296 = vperm.xlu0 %1037, %v1228_v5   ;;  %p1067_p2 = por %p1066_p1, %p1065_p0 }
  0x22   : > { %399 = vperm.xlu1 %1039, %v234_v4   ;;  %989 = vmatpush3.bf16.msra.mxu1 %v961_v27 }
  0x23   : > { %964 = vmatpush3.bf16.msra.mxu0 %v961_v27  ;;  %982 = vmatprep.subr.bf16.mxu1 %v965_v31  ;;  %p1068_p3 = pnand %p1067_p2, %p1061_p13 }
  0x24   : > { %966 = vmatprep.subr.bf16.mxu0 %v965_v31 }
  0x25   : > { %261 = vperm.xlu0 %1037, %v1239_v9  }
  0x26   : > { %371 = vperm.xlu1 %1039, %v1215_v1   ;;  %990 = vmatpush3.bf16.msra.mxu1 %v965_v31 }
  0x27   : > { %968 = vmatpush3.bf16.msra.mxu0 %v965_v31  ;;  %983 = vmatprep.subr.bf16.mxu1 %v969_v34 }
  0x28   : > { %970 = vmatprep.subr.bf16.mxu0 %v969_v34 }
  0x29   : > { %266 = vperm.xlu0 %1037, %v1250_v13  }
  0x2a   : > { %1040 = vset.pattern.permute.xlu1 %v1122_v0  ;;  %991 = vmatpush3.bf16.msra.mxu1 %v969_v34 }
  0x2b   : > { %256 = vperm.xlu1 %1040, %v1253_v15   ;;  %972 = vmatpush3.bf16.msra.mxu0 %v969_v34 }
  0x2c   : > { %984 = vmatprep.subr.bf16.mxu1 %v973_v37  ;;  %974 = vmatprep.subr.bf16.mxu0 %v973_v37 }
  0x2d   : > { %316 = vperm.xlu0 %1037, %v1264_v18  }
  0x2e   : > { %992 = vmatpush3.bf16.msra.mxu1 %v973_v37 }
  0x2f   : > { %1041 = vset.pattern.permute.xlu1 %v1124_v24  ;;  %976 = vmatpush3.bf16.msra.mxu0 %v973_v37 }
  0x30   : > { %467 = vperm.xlu1 %1041, %v1218_v2  }
  0x31   : > { %281 = vperm.xlu0 %1037, %v1275_v22  }
  0x34   : > { %499 = vperm.xlu1 %1041, %v234_v4  }
  0x35   : > { %1052 = vset.pattern.permute.xlu0 %v1123_v6 }
  0x36   : > { %367 = vperm.xlu0 %1052, %v1218_v2  }
  0x38   : > { %1042 = vset.pattern.permute.xlu1 %v1122_v0 }
  0x39   : > { %301 = vperm.xlu1 %1042, %v237_v30  }
  0x3a   : > { %403 = vperm.xlu0 %1052, %v1223_v3  }
  0x3d   : > { %1043 = vset.pattern.permute.xlu1 %v1124_v24 }
  0x3e   : > { %503 = vperm.xlu1 %1043, %v1223_v3   ;;  %407 = vperm.xlu0 %1052, %v1228_v5  }
  0x42   : > { %1044 = vset.pattern.permute.xlu1 %v1123_v6  ;;  %383 = vperm.xlu0 %1052, %v1250_v13  }
  0x43   : > { %375 = vperm.xlu1 %1044, %v1253_v15  }
  0x46   : > { %419 = vperm.xlu0 %1052, %v239_v38  }
  0x47   : > { %379 = vperm.xlu1 %1044, %v1239_v9  }
  0x4a   : > { %423 = vperm.xlu0 %1052, %v1264_v18  }
  0x4b   : > { %411 = vperm.xlu1 %1044, %v237_v30  }
  0x4e   : > { %1056 = vset.pattern.permute.xlu0 %v1124_v24 }
  0x4f   : > { %1045 = vset.pattern.permute.xlu1 %v1122_v0  ;;  %471 = vperm.xlu0 %1056, %v1215_v1  }
  0x50   : > { %306 = vperm.xlu1 %1045, %v238_v39  }
  0x53   : > { %507 = vperm.xlu0 %1056, %v1228_v5   ;;  %v1362_v5 = vrot.slane %v242_v54, %v532_v62 }
  0x54   : > { %1046 = vset.pattern.permute.xlu1 %v1124_v24 }
  0x55   : > { %475 = vperm.xlu1 %1046, %v1253_v15  }
  0x57   : > { %479 = vperm.xlu0 %1056, %v1239_v9  }
  0x59   : > { %1047 = vset.pattern.permute.xlu1 %v1122_v0 }
  0x5a   : > { %271 = vperm.xlu1 %1047, %v231_v40  }
  0x5b   : > { %487 = vperm.xlu0 %1056, %v231_v40  }
  0x5e   : > { %311 = vperm.xlu1 %1047, %v239_v38  }
  0x5f   : > { %491 = vperm.xlu0 %1056, %v232_v41  }
  0x62   : > { %1048 = vset.pattern.permute.xlu1 %v1124_v24 }
  0x63   : > { %511 = vperm.xlu1 %1048, %v237_v30   ;;  %527 = vperm.xlu0 %1056, %v241_v42  }
  0x67   : > { %1049 = vset.pattern.permute.xlu1 %v1123_v6 }
  0x68   : > { %415 = vperm.xlu1 %1049, %v238_v39  }
  0x6c   : > { %387 = vperm.xlu1 %1049, %v231_v40  }
  0x70   : > { %1050 = vset.pattern.permute.xlu1 %v1122_v0 }
  0x71   : > { %276 = vperm.xlu1 %1050, %v232_v41  }
  0x75   : > { %1051 = vset.pattern.permute.xlu1 %v1124_v24 }
  0x76   : > { %483 = vperm.xlu1 %1051, %v1250_v13  }
  0x7a   : > { %515 = vperm.xlu1 %1051, %v238_v39  }
  0x7e   : > { %1053 = vset.pattern.permute.xlu1 %v1122_v0 }
  0x7f   : > { %321 = vperm.xlu1 %1053, %v241_v42  }
  0x83   : > { %1054 = vset.pattern.permute.xlu1 %v1124_v24 }
  0x84   : > { %519 = vperm.xlu1 %1054, %v239_v38  }
  0x88   : > { %1055 = vset.pattern.permute.xlu1 %v1123_v6 }
  0x89   : > { %391 = vperm.xlu1 %1055, %v232_v41  }
  0x8d   : > { %395 = vperm.xlu1 %1055, %v1275_v22  }
  0x91   : > { %427 = vperm.xlu1 %1055, %v241_v42  }
  0x95   : > { %1057 = vset.pattern.permute.xlu1 %v1124_v24 }
  0x96   : > { %523 = vperm.xlu1 %1057, %v1264_v18  }
  0x98   : > { %v252_v43 = vpop.permute.xlu1 %251  ;;  %v247_v44 = vpop.permute.xlu0 %246 }
  0x99   : > { %v328_v1 = vmul.f32 %v1347_v57, %v247_v44  ;;  %v329_v35 = vmul.f32 %v1347_v57, %v252_v43 }
  0x9a   : > { %495 = vperm.xlu1 %1057, %v1275_v22  }
  0x9b   : > { %v350_v7 = vadd.f32 %v1355_v63, %v328_v1  ;;  %v351_v42 = vadd.f32 %v1355_v63, %v329_v35 }
  0x9c   : > { %v292_v45 = vpop.permute.xlu1 %291  ;;  %v287_v46 = vpop.permute.xlu0 %286 }
  0x9d   : > { %v336_v59 = vmul.f32 %v1347_v57, %v287_v46  ;;  %v337_v13 = vmul.f32 %v1347_v57, %v292_v45 }
  0x9f   : > { %v358_v2 = vadd.f32 %v1355_v63, %v336_v59  ;;  %v359_v21 = vadd.f32 %v1355_v63, %v337_v13 }
  0xa0   : > { %v297_v48 = vpop.permute.xlu0 %296 }
  0xa1   : > { %v400_v49 = vpop.permute.xlu1 %399  ;;  %v338_v36 = vmul.f32 %v1347_v57, %v297_v48 }
  0xa2   : > { %v442_v3 = vmul.f32 %v1350_v60, %v400_v49 }
  0xa3   : > { %v360_v44 = vadd.f32 %v1355_v63, %v338_v36 }
  0xa4   : > { %v262_v51 = vpop.permute.xlu0 %261  ;;  %v458_v9 = vadd.f32 %v442_v3, %v358_v2 }
  0xa5   : > { %v372_v52 = vpop.permute.xlu1 %371  ;;  %v331_v46 = vmul.f32 %v1347_v57, %v262_v51 }
  0xa6   : > { %v435_v40 = vmul.f32 %v1350_v60, %v372_v52 }
  0xa7   : > { %v353_v55 = vadd.f32 %v1355_v63, %v331_v46 }
  0xa8   : > { %v1345_v56 = vpop.permute.xlu0 %266  ;;  %v451_v43 = vadd.f32 %v435_v40, %v351_v42 }
  0xaa   : > { %v257_v58 = vpop.permute.xlu1 %256 }
  0xab   : > { %v330_v48 = vmul.f32 %v1347_v57, %v257_v58 }
  0xac   : > { %v317_v61 = vpop.permute.xlu0 %316 }
  0xad   : > { %v342_v31 = vmul.f32 %v1347_v57, %v317_v61  ;;  %v352_v61 = vadd.f32 %v1355_v63, %v330_v48 }
  0xaf   : > { %v468_v0 = vpop.permute.xlu1 %467  ;;  %v364_v34 = vadd.f32 %v1355_v63, %v342_v31 }
  0xb0   : > { %v1360_v4 = vpop.permute.xlu0 %281  ;;  %v534_v14 = vmul.f32 %v1362_v5, %v468_v0 }
  0xb3   : > { %v500_v6 = vpop.permute.xlu1 %499 }
  0xb4   : > { %v542_v8 = vmul.f32 %v1362_v5, %v500_v6 }
  0xb5   : > { %v368_v10 = vpop.permute.xlu0 %367 }
  0xb6   : > { %v434_v11 = vmul.f32 %v1350_v60, %v368_v10  ;;  %v558_v12 = vadd.f32 %v542_v8, %v458_v9 }
  0xb8   : > { %v1369_v15 = vpop.permute.xlu1 %301  ;;  %v574_v16 = vmax.f32 %v558_v12, 0.0  ;;  %v450_v17 = vadd.f32 %v434_v11, %v350_v7 }
  0xb9   : > { %v404_v18 = vpop.permute.xlu0 %403 }
  0xba   : > { %v443_v19 = vmul.f32 %v1350_v60, %v404_v18  ;;  %933 = vmatprep.mubr.f32.mxu1 %v574_v16  ;;  %v550_v20 = vadd.f32 %v534_v14, %v450_v17  ;;  %v339_v16 = vmul.f32 %v1347_v57, %v1369_v15  ;;  %v332_v15 = vmul.f32 %v1347_v57, %v1345_v56 }
  0xbc   : > { %v566_v22 = vmax.f32 %v550_v20, 0.0  ;;  %v459_v25 = vadd.f32 %v443_v19, %v359_v21  ;;  %v361_v19 = vadd.f32 %v1355_v63, %v339_v16 }
  0xbd   : > { %v504_v23 = vpop.permute.xlu1 %503  ;;  %v408_v24 = vpop.permute.xlu0 %407 }
  0xbe   : > { %v543_v26 = vmul.f32 %v1362_v5, %v504_v23  ;;  %921 = vmatprep.mubr.f32.mxu0 %v566_v22  ;;  %v444_v45 = vmul.f32 %v1350_v60, %v408_v24 }
  0xc0   : > { %v559_v27 = vadd.f32 %v543_v26, %v459_v25  ;;  %v460_v53 = vadd.f32 %v444_v45, %v360_v44 }
  0xc1   : > { %v1374_v28 = vpop.permute.xlu0 %383 }
  0xc2   : > { %v575_v29 = vmax.f32 %v559_v27, 0.0  ;;  %v376_v30 = vpop.permute.xlu1 %375  ;;  %v438_v35 = vmul.f32 %v1350_v60, %v1374_v28 }
  0xc3   : > { %v436_v52 = vmul.f32 %v1350_v60, %v376_v30 }
  0xc4   : > { %934 = vmatmul.mubr.f32.vlgmr.msra.gmra.mrb[0].mxu1 %v575_v29 }
  0xc5   : > { %v1377_v32 = vpop.permute.xlu0 %419  ;;  %v452_v2 = vadd.f32 %v436_v52, %v352_v61 }
  0xc6   : > { %v380_v33 = vpop.permute.xlu1 %379 }
  0xc7   : > { %v437_v62 = vmul.f32 %v1350_v60, %v380_v33 }
  0xc9   : > { %v424_v37 = vpop.permute.xlu0 %423  ;;  %v453_v7 = vadd.f32 %v437_v62, %v353_v55  ;;  %v447_v55 = vmul.f32 %v1350_v60, %v1377_v32 }
  0xca   : > { %v412_v38 = vpop.permute.xlu1 %411  ;;  %v448_v39 = vmul.f32 %v1350_v60, %v424_v37 }
  0xcb   : > { %v445_v18 = vmul.f32 %v1350_v60, %v412_v38 }
  0xcc   : > { %v1384_v41 = vadd.f32 %v448_v39, %v364_v34  ;;  %v354_v34 = vadd.f32 %v1355_v63, %v332_v15 }
  0xcd   : > { %v461_v21 = vadd.f32 %v445_v18, %v361_v19  ;;  %v335_v19 = vmul.f32 %v1347_v57, %v1360_v4 }
  0xce   : > { %v472_v47 = vpop.permute.xlu0 %471  ;;  %v454_v40 = vadd.f32 %v438_v35, %v354_v34 }
  0xcf   : > { %v535_v49 = vmul.f32 %v1362_v5, %v472_v47  ;;  %v307_v50 = vpop.permute.xlu1 %306 }
  0xd0   : > { %v340_v38 = vmul.f32 %v1347_v57, %v307_v50 }
  0xd1   : > { %v551_v54 = vadd.f32 %v535_v49, %v451_v43 }
  0xd2   : > { %v508_v59 = vpop.permute.xlu0 %507  ;;  %v362_v45 = vadd.f32 %v1355_v63, %v340_v38 }
  0xd3   : > { %v567_v0 = vmax.f32 %v551_v54, 0.0  ;;  %v544_v51 = vmul.f32 %v1362_v5, %v508_v59 }
  0xd4   : > { %v476_v1 = vpop.permute.xlu1 %475 }
  0xd5   : > { %v560_v58 = vadd.f32 %v544_v51, %v460_v53  ;;  %v536_v3 = vmul.f32 %v1362_v5, %v476_v1  ;;  %922 = vmatmul.mubr.f32.vlgmr.msra.gmra.mrb[0].mxu0 %v567_v0 }
  0xd6   : > { %v480_v6 = vpop.permute.xlu0 %479 }
  0xd7   : > { %v576_v8 = vmax.f32 %v560_v58, 0.0  ;;  %v552_v9 = vadd.f32 %v536_v3, %v452_v2  ;;  %v537_v10 = vmul.f32 %v1362_v5, %v480_v6 }
  0xd9   : > { %v568_v11 = vmax.f32 %v552_v9, 0.0  ;;  %v553_v12 = vadd.f32 %v537_v10, %v453_v7  ;;  %v272_v13 = vpop.permute.xlu1 %271  ;;  %936 = vmatprep.mubr.f32.mxu1 %v576_v8 }
  0xda   : > { %v333_v27 = vmul.f32 %v1347_v57, %v272_v13  ;;  %v488_v30 = vpop.permute.xlu0 %487 }
  0xdb   : > { %v569_v14 = vmax.f32 %v553_v12, 0.0  ;;  %924 = vmatprep.mubr.f32.mxu0 %v568_v11  ;;  %v539_v37 = vmul.f32 %v1362_v5, %v488_v30 }
  0xdc   : > { %v355_v33 = vadd.f32 %v1355_v63, %v333_v27 }
  0xdd   : > { %v312_v17 = vpop.permute.xlu1 %311  ;;  %925 = vmatmul.mubr.f32.gmra.mrb[2].mxu0 %v569_v14 }
  0xde   : > { %v341_v53 = vmul.f32 %v1347_v57, %v312_v17  ;;  %v492_v7 = vpop.permute.xlu0 %491 }
  0xdf   : > { %v540_v32 = vmul.f32 %v1362_v5, %v492_v7 }
  0xe0   : > { %v363_v59 = vadd.f32 %v1355_v63, %v341_v53 }
  0xe2   : > { %v512_v20 = vpop.permute.xlu1 %511  ;;  %v463_v62 = vadd.f32 %v447_v55, %v363_v59  ;;  %v528_v17 = vpop.permute.xlu0 %527 }
  0xe3   : > { %v545_v22 = vmul.f32 %v1362_v5, %v512_v20  ;;  %v549_v20 = vmul.f32 %v1362_v5, %v528_v17 }
  0xe5   : > { %v561_v23 = vadd.f32 %v545_v22, %v461_v21 }
  0xe7   : > { %v577_v24 = vmax.f32 %v561_v23, 0.0  ;;  %v416_v25 = vpop.permute.xlu1 %415 }
  0xe8   : > { %v446_v56 = vmul.f32 %v1350_v60, %v416_v25  ;;  %v357_v25 = vadd.f32 %v1355_v63, %v335_v19 }
  0xe9   : > { %937 = vmatmul.mubr.f32.gmra.mrb[2].mxu1 %v577_v24 }
  0xea   : > { %v462_v43 = vadd.f32 %v446_v56, %v362_v45 }
  0xeb   : > { %v388_v26 = vpop.permute.xlu1 %387 }
  0xec   : > { %v439_v29 = vmul.f32 %v1350_v60, %v388_v26 }
  0xee   : > { %v455_v36 = vadd.f32 %v439_v29, %v355_v33 }
  0xf0   : > { %v277_v31 = vpop.permute.xlu1 %276  ;;  %v555_v44 = vadd.f32 %v539_v37, %v455_v36 }
  0xf1   : > { %v334_v51 = vmul.f32 %v1347_v57, %v277_v31 }
  0xf2   : > { %v571_v49 = vmax.f32 %v555_v44, 0.0 }
  0xf3   : > { %v356_v3 = vadd.f32 %v1355_v63, %v334_v51 }
  0xf5   : > { %v484_v39 = vpop.permute.xlu1 %483 }
  0xf6   : > { %v538_v42 = vmul.f32 %v1362_v5, %v484_v39 }
  0xf8   : > { %v554_v46 = vadd.f32 %v538_v42, %v454_v40 }
  0xf9   : > { %v516_v47 = vpop.permute.xlu1 %515 }
  0xfa   : > { %v570_v48 = vmax.f32 %v554_v46, 0.0  ;;  %v546_v28 = vmul.f32 %v1362_v5, %v516_v47 }
  0xfc   : > { %v562_v52 = vadd.f32 %v546_v28, %v462_v43  ;;  %927 = vmatprep.mubr.f32.mxu0 %v570_v48 }
  0xfd   : > { %928 = vmatmul.mubr.f32.gmra.mrb[4].mxu0 %v571_v49 }
  0xfe   : > { %v578_v50 = vmax.f32 %v562_v52, 0.0  ;;  %v322_v54 = vpop.permute.xlu1 %321 }
  0xff   : > { %v343_v10 = vmul.f32 %v1347_v57, %v322_v54 }
 0x100   : > { %939 = vmatprep.mubr.f32.mxu1 %v578_v50 }
 0x101   : > { %v365_v14 = vadd.f32 %v1355_v63, %v343_v10 }
 0x103   : > { %v520_v61 = vpop.permute.xlu1 %519 }
 0x104   : > { %v547_v0 = vmul.f32 %v1362_v5, %v520_v61 }
 0x106   : > { %v563_v1 = vadd.f32 %v547_v0, %v463_v62 }
 0x108   : > { %v579_v2 = vmax.f32 %v563_v1, 0.0  ;;  %v392_v58 = vpop.permute.xlu1 %391 }
 0x109   : > { %v440_v6 = vmul.f32 %v1350_v60, %v392_v58 }
 0x10a   : > { %940 = vmatmul.mubr.f32.gmra.mrb[4].mxu1 %v579_v2 }
 0x10b   : > { %v456_v8 = vadd.f32 %v440_v6, %v356_v3 }
 0x10c   : > { %v396_v9 = vpop.permute.xlu1 %395 }
 0x10d   : > { %v556_v11 = vadd.f32 %v540_v32, %v456_v8  ;;  %v441_v22 = vmul.f32 %v1350_v60, %v396_v9 }
 0x10f   : > { %v572_v12 = vmax.f32 %v556_v11, 0.0  ;;  %v457_v15 = vadd.f32 %v441_v22, %v357_v25 }
 0x110   : > { %v428_v13 = vpop.permute.xlu1 %427 }
 0x111   : > { %v449_v16 = vmul.f32 %v1350_v60, %v428_v13  ;;  %930 = vmatprep.mubr.f32.mxu0 %v572_v12  ;;  %v850_v60 = vld [vmem:[%s1518_s4] ss:$0 sm:$0xff] }
 0x113   : > { %v465_v18 = vadd.f32 %v449_v16, %v365_v14 }
 0x115   : > { %v524_v21 = vpop.permute.xlu1 %523  ;;  %v565_v24 = vadd.f32 %v549_v20, %v465_v18 }
 0x116   : > { %v548_v23 = vmul.f32 %v1362_v5, %v524_v21 }
 0x117   : > { %v581_v57 = vmax.f32 %v565_v24, 0.0 }
 0x118   : > { %v564_v26 = vadd.f32 %v548_v23, %v1384_v41 }
 0x119   : > { %v496_v27 = vpop.permute.xlu1 %495 }
 0x11a   : > { %v580_v29 = vmax.f32 %v564_v26, 0.0  ;;  %v541_v30 = vmul.f32 %v1362_v5, %v496_v27 }
 0x11c   : > { %v557_v4 = vadd.f32 %v541_v30, %v457_v15  ;;  %942 = vmatprep.mubr.f32.mxu1 %v580_v29 }
 0x11d   : > { %943 = vmatmul.mubr.f32.gmra.mrb[6].mxu1 %v581_v57 }
 0x11e   : > { %v573_v31 = vmax.f32 %v557_v4, 0.0 }
 0x120   : > { %931 = vmatmul.mubr.f32.gmra.mrb[6].mxu0 %v573_v31 }
 0x197   : > { %v935_v63 = vpop.f32.mrb[0].mxu1 }
 0x198   : > { %v717_v41 = vadd.f32 %v935_v63, %v850_v60  ;;  %v711_v33 = vpop.f32.mrb[1].mxu1 }
 0x199   : > { %v712_v34 = vadd.f32 %v850_v60, %v711_v33 }
 0x19a   : > { %759 = vst [vmem:[%s1444_s25 + $0x48] sm:$0xff] %v717_v41 }
 0x19b   : > { %758 = vst [vmem:[%s1444_s25 + $0x40] sm:$0xff] %v712_v34 }
 0x1a8   : > { %v923_v5 = vpop.f32.mrb[0].mxu0 }
 0x1a9   : > { %v677_v35 = vadd.f32 %v923_v5, %v850_v60  ;;  %v671_v36 = vpop.f32.mrb[1].mxu0 }
 0x1aa   : > { %v672_v37 = vadd.f32 %v850_v60, %v671_v36 }
 0x1ab   : > { %751 = vst [vmem:[%s1444_s25 + $0x8] sm:$0xff] %v677_v35 }
 0x1ac   : > { %750 = vst [vmem:[%s1444_s25] sm:$0xff] %v672_v37 }
 0x1b0   : > { %v926_v38 = vpop.f32.mrb[2].mxu0 }
 0x1b1   : > { %v687_v39 = vadd.f32 %v926_v38, %v850_v60  ;;  %v681_v40 = vpop.f32.mrb[3].mxu0 }
 0x1b2   : > { %v682_v56 = vadd.f32 %v850_v60, %v681_v40 }
 0x1b3   : > { %753 = vst [vmem:[%s1444_s25 + $0x18] sm:$0xff] %v687_v39 }
 0x1b4   : > { %752 = vst [vmem:[%s1444_s25 + $0x10] sm:$0xff] %v682_v56 }
 0x1bc   : > { %v938_v42 = vpop.f32.mrb[2].mxu1 }
 0x1bd   : > { %v727_v44 = vadd.f32 %v938_v42, %v850_v60  ;;  %v721_v45 = vpop.f32.mrb[3].mxu1 }
 0x1be   : > { %v722_v46 = vadd.f32 %v850_v60, %v721_v45 }
 0x1bf   : > { %761 = vst [vmem:[%s1444_s25 + $0x58] sm:$0xff] %v727_v44 }
 0x1c0   : > { %760 = vst [vmem:[%s1444_s25 + $0x50] sm:$0xff] %v722_v46 }
 0x1d0   : > { %v929_v47 = vpop.f32.mrb[4].mxu0 }
 0x1d1   : > { %v697_v43 = vadd.f32 %v929_v47, %v850_v60  ;;  %v691_v48 = vpop.f32.mrb[5].mxu0 }
 0x1d2   : > { %v692_v28 = vadd.f32 %v850_v60, %v691_v48 }
 0x1d3   : > { %755 = vst [vmem:[%s1444_s25 + $0x28] sm:$0xff] %v697_v43 }
 0x1d4   : > { %754 = vst [vmem:[%s1444_s25 + $0x20] sm:$0xff] %v692_v28 }
 0x1dd   : > { %v941_v49 = vpop.f32.mrb[4].mxu1 }
 0x1de   : > { %v737_v53 = vadd.f32 %v941_v49, %v850_v60  ;;  %v731_v52 = vpop.f32.mrb[5].mxu1 }
 0x1df   : > { %v732_v50 = vadd.f32 %v850_v60, %v731_v52 }
 0x1e0   : > { %763 = vst [vmem:[%s1444_s25 + $0x68] sm:$0xff] %v737_v53 }
 0x1e1   : > { %762 = vst [vmem:[%s1444_s25 + $0x60] sm:$0xff] %v732_v50 }
 0x1f0   : > { %v944_v54 = vpop.f32.mrb[6].mxu1 }
 0x1f1   : > { %v747_v55 = vadd.f32 %v944_v54, %v850_v60  ;;  %v741_v59 = vpop.f32.mrb[7].mxu1 }
 0x1f2   : > { %v742_v61 = vadd.f32 %v850_v60, %v741_v59 }
 0x1f3   : > { %765 = vst [vmem:[%s1444_s25 + $0x78] sm:$0xff] %v747_v55  ;;  %v932_v62 = vpop.f32.mrb[6].mxu0 }
 0x1f4   : > { %764 = vst [vmem:[%s1444_s25 + $0x70] sm:$0xff] %v742_v61  ;;  %v707_v0 = vadd.f32 %v932_v62, %v850_v60  ;;  %v701_v51 = vpop.f32.mrb[7].mxu0 }
 0x1f5   : > { %v702_v1 = vadd.f32 %v850_v60, %v701_v51 }
 0x1f6   : > { %757 = vst [vmem:[%s1444_s25 + $0x38] sm:$0xff] %v707_v0 }
 0x1f7   : > { %756 = vst [vmem:[%s1444_s25 + $0x30] sm:$0xff] %v702_v1 }
 0x1f8   : > { %1071 = shalt.err (!%p1068_p3)
}
 0x1f9   : > { %s1072_s13 = scalar_lea.hbm %s1465_s8, 2048  ;;  %s1076_s16 = scalar_lea.hbm %s1519_s5, 4096 }
 0x1fa   : > { %p1073_p4 = scmp.ne.s32.totalorder %s1465_s8, %s1072_s13  ;;  %p1077_p9 = scmp.lt.u32.totalorder %s1465_s8, %s1519_s5 }
 0x1fb   : > { %p1078_p10 = scmp.lt.u32.totalorder %s1076_s16, %s1072_s13  ;;  %p1080_p12 = scmp.lt.u32.totalorder %s1072_s13, %s1465_s8 }
 0x1fc   : > { %p1074_p7 = pnand %p1073_p4, %p1196_p5 }
 0x1fd   : > { %p1079_p11 = por %p1078_p10, %p1077_p9 }
 0x1fe   : > { %p1075_p8 = pneg %p1074_p7 }
 0x1ff   : > { %p1081_p13 = por %p1080_p12, %p1079_p11 }
 0x201   : > { %p1082_p0 = pnand %p1081_p13, %p1075_p8 }
 0x203   : > { %1085 = shalt.err (!%p1082_p0)
}
 0x204   : > { %s1126_s25 = smov 128   ;;  %s1127_s26 = smov 8  }
 0x205   : > { %993 = dma.vmem_to_hbm [thread:$0]  (%p1196_p5), %s1467_s30, 2048, %s1465_s8, %s1473_s22, %s1126_s25, %s1126_s25, %s1127_s26  }
 0x206 PF: > { %p999_p1 = scmp.ge.s32.totalorder %s1120_s21, 2  ;;  %s795_s6 = sand.u32 1, %s1108_s18  }
 0x207   : > { %s796_s7 = scalar_lea.sflag [#allocation3], %s795_s6 }
 0x208   : > { %p996_p2 = pnand %p999_p1, %p1200_p6 }
 0x20a   : > { %1103 = dma.done.wait (!%p996_p2), %s796_s7, 2048  }
 0x20b   : > { %1105 = vsyncadd (!%p996_p2), %s796_s7, 4294965248  ;;  %p15_p3 = scmp.ge.s32.totalorder %s1183_s24, 4   ;;  %s1522_s18 = smov %s1112_s19 }
 0x20c   : > { %s1523_s19 = smov %s1116_s20  ;;  %s1524_s20 = smov %s1194_s27 }
 0x20d   : > { %s1525_s21 = smov %s1183_s24  ;;  %17 = sbr.rel (!%p15_p3) target bundleno = 3 (0x3), region = 75 }
 0x214   :  { %801 = vsyncpa [#allocation3], 1 }
 0x215   :  { %803 = vsyncpa [#allocation3 + $0x1], 1 }

</bundles_post_ra>
